<compile_context>
chip_gen: v6e
topology: v6e:2x2x1
jax: 0.10.0
libtpu: 0.0.40
codegen_flags: <defaults>
</compile_context>

<pallas_src>
import math

import jax
import jax.numpy as jnp
from jax.experimental import pallas as pl
from jax.experimental.pallas import tpu as pltpu


def _ln(v, g, b, eps=1e-5):
    mu = jnp.mean(v, axis=-1, keepdims=True)
    var = jnp.mean(jnp.square(v - mu), axis=-1, keepdims=True)
    return (v - mu) * jax.lax.rsqrt(var + eps) * g + b


def _cross_attn_kernel(x_ref, ctx_ref,
                       ctxp_wt, ctxp_b,
                       cln_g, cln_b,
                       wv_t, bv,
                       opw_t, opb,
                       ffln_g, ffln_b,
                       ff1w_t, ff1b,
                       ff2w_t, ff2b,
                       o_ref):
    Bb, S, C = x_ref.shape

    # ---- degenerate cross-attention, one row per batch element -------------
    # softmax over identical keys is exactly uniform and all value rows are
    # identical, so the MHA output is out_proj(v_row) independent of the query.
    ctx = ctx_ref[pl.ds(pl.program_id(0) * Bb, Bb), :]              # (Bb, Dc)
    ctx_p = jnp.dot(ctx.astype(jnp.bfloat16), ctxp_wt[...],
                    preferred_element_type=jnp.float32) + ctxp_b[...]
    ctx_ln = _ln(ctx_p, cln_g[...], cln_b[...])                     # (Bb, C)
    v = jnp.dot(ctx_ln.astype(jnp.bfloat16), wv_t[...],
                preferred_element_type=jnp.float32) + bv[...]       # (Bb, C)
    attn_row = jnp.dot(v.astype(jnp.bfloat16), opw_t[...],
                       preferred_element_type=jnp.float32) + opb[...]  # (Bb, C)

    # ---- residual 1: broadcast the per-batch attention row over S ----------
    x = x_ref[...]                                                  # (Bb, S, C)
    h1 = (x + attn_row[:, None, :]).reshape(Bb * S, C)              # (Bb*S, C)

    # ---- ff_self: LN -> Linear -> GELU(exact erf) -> Linear, residual 2 ----
    y = _ln(h1, ffln_g[...], ffln_b[...])
    y = jnp.dot(y.astype(jnp.bfloat16), ff1w_t[...],
                preferred_element_type=jnp.float32) + ff1b[...]
    y = 0.5 * y * (1.0 + jax.lax.erf(y * (1.0 / math.sqrt(2.0))))
    y = jnp.dot(y.astype(jnp.bfloat16), ff2w_t[...],
                preferred_element_type=jnp.float32) + ff2b[...]

    o_ref[...] = (y + h1).reshape(Bb, S, C).astype(o_ref.dtype)


def cross_attention_forward(x_nchw, context, p, *, num_heads=4):
    del num_heads  # attention collapses to a rank-1 update; head count is irrelevant
    B, C, H, W = x_nchw.shape
    S = H * W

    x_bsc = x_nchw.reshape(B, C, S).transpose(0, 2, 1)              # (B, S, C)

    # Pre-split / pre-transpose / pre-cast weights once on the host:
    # only W_v of the packed in_proj is live; transposed for lane-dense RHS;
    # bf16 MXU operands with f32 accumulation; biases / LN params stay f32.
    to_bf16_t = lambda w: jnp.asarray(w).T.astype(jnp.bfloat16)
    ctxp_wt = to_bf16_t(p["ctxp_w"])                                # (Dc, C)
    wv_t    = to_bf16_t(p["ipw"][2 * C:3 * C, :])                   # (C, C)
    bv      = p["ipb"][:, 2 * C:3 * C]                              # (1, C)
    opw_t   = to_bf16_t(p["opw"])
    ff1w_t  = to_bf16_t(p["ff1w"])
    ff2w_t  = to_bf16_t(p["ff2w"])

    # Batch blocking: at most 2 grid steps (one per v7x TensorCore), each
    # processing Bb batch elements, so per-step overhead is amortized.
    num_blocks = 2 if (B >= 2 and B % 2 == 0) else 1
    Bb = B // num_blocks

    def full(arr):
        return pl.BlockSpec(arr.shape, lambda b, _n=arr.ndim: (0,) * _n)

    weights = (ctxp_wt, p["ctxp_b"], p["cln_g"], p["cln_b"],
               wv_t, bv, opw_t, p["opb"],
               p["ffln_g"], p["ffln_b"],
               ff1w_t, p["ff1b"], ff2w_t, p["ff2b"])

    out_bsc = pl.pallas_call(
        _cross_attn_kernel,
        out_shape=jax.ShapeDtypeStruct((B, S, C), jnp.float32),
        grid=(num_blocks,),
        in_specs=[pl.BlockSpec((Bb, S, C), lambda b: (b, 0, 0)),    # x
                  full(context)]                                    # context (full)
                 + [full(w) for w in weights],
        out_specs=pl.BlockSpec((Bb, S, C), lambda b: (b, 0, 0)),
        compiler_params=pltpu.CompilerParams(
            dimension_semantics=("parallel",)),
    )(x_bsc, context, *weights)

    return out_bsc.transpose(0, 2, 1).reshape(B, C, H, W)


def reference_forward(x_nchw, context, p, *, num_heads=4):
    """Pure-JAX mirror of the full PyTorch forward (validates the collapse)."""
    B, C, H, W = x_nchw.shape
    S = H * W
    x = x_nchw.reshape(B, C, S).transpose(0, 2, 1)
    x_ln = _ln(x, p["ln_g"][0], p["ln_b"][0])
    ctx = context @ p["ctxp_w"].T + p["ctxp_b"][0]
    ctx = jnp.broadcast_to(ctx[:, None, :], (B, S, C))
    ctx_ln = _ln(ctx, p["cln_g"][0], p["cln_b"][0])
    Wp, bb = p["ipw"], p["ipb"][0]
    q = x_ln @ Wp[:C].T + bb[:C]
    k = ctx_ln @ Wp[C:2 * C].T + bb[C:2 * C]
    v = ctx_ln @ Wp[2 * C:].T + bb[2 * C:]
    hd = C // num_heads
    qh = q.reshape(B, S, num_heads, hd).transpose(0, 2, 1, 3)
    kh = k.reshape(B, S, num_heads, hd).transpose(0, 2, 1, 3)
    vh = v.reshape(B, S, num_heads, hd).transpose(0, 2, 1, 3)
    sc = (qh / jnp.sqrt(float(hd))) @ kh.transpose(0, 1, 3, 2)
    pm = jax.nn.softmax(sc, axis=-1)
    o = (pm @ vh).transpose(0, 2, 1, 3).reshape(B, S, C)
    o = o @ p["opw"].T + p["opb"][0]
    h1 = o + x
    y = _ln(h1, p["ffln_g"][0], p["ffln_b"][0])
    y = y @ p["ff1w"].T + p["ff1b"][0]
    y = 0.5 * y * (1.0 + jax.lax.erf(y / jnp.sqrt(2.0)))
    y = y @ p["ff2w"].T + p["ff2b"][0]
    out = y + h1
    return out.transpose(0, 2, 1).reshape(B, C, H, W)


def init_params(key, channels, context_dim):
    C, Dc = channels, context_dim
    ks = jax.random.split(key, 16)
    n = lambda k, s, sc=0.05: (jax.random.normal(k, s, jnp.float32) * sc)
    return {
        "ln_g":   1.0 + n(ks[0], (1, C), 0.1), "ln_b":   n(ks[1], (1, C), 0.1),
        "ctxp_w": n(ks[2], (C, Dc)),           "ctxp_b": n(ks[3], (1, C)),
        "cln_g":  1.0 + n(ks[4], (1, C), 0.1), "cln_b":  n(ks[5], (1, C), 0.1),
        "ipw":    n(ks[6], (3 * C, C)),        "ipb":    n(ks[7], (1, 3 * C)),
        "opw":    n(ks[8], (C, C)),            "opb":    n(ks[9], (1, C)),
        "ffln_g": 1.0 + n(ks[10], (1, C), 0.1), "ffln_b": n(ks[11], (1, C), 0.1),
        "ff1w":   n(ks[12], (C, C)),           "ff1b":   n(ks[13], (1, C)),
        "ff2w":   n(ks[14], (C, C)),           "ff2b":   n(ks[15], (1, C)),
    }


if __name__ == "__main__":
    # Small shapes consistent with the module: channels divisible by 4 heads.
    B, C, size, Dc = 2, 32, 8, 16
    H = W = size

    key = jax.random.PRNGKey(0)
    kx, kc, kp = jax.random.split(key, 3)
    x = jax.random.normal(kx, (B, C, H, W), jnp.float32)
    context = jax.random.normal(kc, (B, Dc), jnp.float32)
    params = init_params(kp, C, Dc)

    out = cross_attention_forward(x, context, params, num_heads=4)
    out = jax.block_until_ready(out)

    ref = reference_forward(x, context, params, num_heads=4)
    assert out.shape == (B, C, H, W)
    # tolerance covers bf16 MXU operands (f32 accumulation / LN / residuals)
    assert jnp.allclose(out, ref, rtol=2e-2, atol=2e-2), "mismatch vs pure-JAX reference"

    print("KERNEL_OK")
</pallas_src>

<mosaic_0001>
module attributes {stable_mosaic.version = 11 : i64} {
  func.func @_cross_attn_kernel(%arg0: i32, %arg1: memref<1x64x32xf32, #tpu.memory_space<vmem>>, %arg2: memref<2x16xf32, #tpu.memory_space<vmem>>, %arg3: memref<16x32xbf16, #tpu.memory_space<vmem>>, %arg4: memref<1x32xf32, #tpu.memory_space<vmem>>, %arg5: memref<1x32xf32, #tpu.memory_space<vmem>>, %arg6: memref<1x32xf32, #tpu.memory_space<vmem>>, %arg7: memref<32x32xbf16, #tpu.memory_space<vmem>>, %arg8: memref<1x32xf32, #tpu.memory_space<vmem>>, %arg9: memref<32x32xbf16, #tpu.memory_space<vmem>>, %arg10: memref<1x32xf32, #tpu.memory_space<vmem>>, %arg11: memref<1x32xf32, #tpu.memory_space<vmem>>, %arg12: memref<1x32xf32, #tpu.memory_space<vmem>>, %arg13: memref<32x32xbf16, #tpu.memory_space<vmem>>, %arg14: memref<1x32xf32, #tpu.memory_space<vmem>>, %arg15: memref<32x32xbf16, #tpu.memory_space<vmem>>, %arg16: memref<1x32xf32, #tpu.memory_space<vmem>>, %arg17: memref<1x64x32xf32, #tpu.memory_space<vmem>>) attributes {dimension_semantics = [#tpu.dimension_semantics<parallel>], iteration_bounds = array<i64: 2>, scalar_prefetch = 0 : i64, scratch_operands = 0 : i64, tpu.core_type = #tpu.core_type<tc>, window_params = [{transform_indices = @transform_0, window_bounds = array<i64: 1, 64, 32>}, {pipeline_mode = #tpu.pipeline_mode<synchronous>, transform_indices = @transform_1, window_bounds = array<i64: 2, 16>}, {pipeline_mode = #tpu.pipeline_mode<synchronous>, transform_indices = @transform_2, window_bounds = array<i64: 16, 32>}, {pipeline_mode = #tpu.pipeline_mode<synchronous>, transform_indices = @transform_3, window_bounds = array<i64: 1, 32>}, {pipeline_mode = #tpu.pipeline_mode<synchronous>, transform_indices = @transform_4, window_bounds = array<i64: 1, 32>}, {pipeline_mode = #tpu.pipeline_mode<synchronous>, transform_indices = @transform_5, window_bounds = array<i64: 1, 32>}, {pipeline_mode = #tpu.pipeline_mode<synchronous>, transform_indices = @transform_6, window_bounds = array<i64: 32, 32>}, {pipeline_mode = #tpu.pipeline_mode<synchronous>, transform_indices = @transform_7, window_bounds = array<i64: 1, 32>}, {pipeline_mode = #tpu.pipeline_mode<synchronous>, transform_indices = @transform_8, window_bounds = array<i64: 32, 32>}, {pipeline_mode = #tpu.pipeline_mode<synchronous>, transform_indices = @transform_9, window_bounds = array<i64: 1, 32>}, {pipeline_mode = #tpu.pipeline_mode<synchronous>, transform_indices = @transform_10, window_bounds = array<i64: 1, 32>}, {pipeline_mode = #tpu.pipeline_mode<synchronous>, transform_indices = @transform_11, window_bounds = array<i64: 1, 32>}, {pipeline_mode = #tpu.pipeline_mode<synchronous>, transform_indices = @transform_12, window_bounds = array<i64: 32, 32>}, {pipeline_mode = #tpu.pipeline_mode<synchronous>, transform_indices = @transform_13, window_bounds = array<i64: 1, 32>}, {pipeline_mode = #tpu.pipeline_mode<synchronous>, transform_indices = @transform_14, window_bounds = array<i64: 32, 32>}, {pipeline_mode = #tpu.pipeline_mode<synchronous>, transform_indices = @transform_15, window_bounds = array<i64: 1, 32>}, {transform_indices = @transform_16, window_bounds = array<i64: 1, 64, 32>}]} {
    %c1_i32 = arith.constant 1 : i32
    %0 = arith.muli %arg0, %c1_i32 : i32
    %1 = arith.index_cast %0 : i32 to index
    %c0 = arith.constant 0 : index
    %2 = vector.load %arg2[%1, %c0] : memref<2x16xf32, #tpu.memory_space<vmem>>, vector<1x16xf32>
    %3 = arith.truncf %2 : vector<1x16xf32> to vector<1x16xbf16>
    %c0_0 = arith.constant 0 : index
    %c0_1 = arith.constant 0 : index
    %4 = vector.load %arg3[%c0_0, %c0_1] : memref<16x32xbf16, #tpu.memory_space<vmem>>, vector<16x32xbf16>
    %cst = arith.constant dense<0.000000e+00> : vector<1x32xf32>
    %5 = tpu.matmul %3, %4, %cst {dimension_numbers = #tpu.dot_dimension_numbers<[1], [0], [0], [1], [0, 0, 1, 1], [], []>} : vector<1x16xbf16>, vector<16x32xbf16>, vector<1x32xf32> -> vector<1x32xf32>
    %c0_2 = arith.constant 0 : index
    %c0_3 = arith.constant 0 : index
    %6 = vector.load %arg4[%c0_2, %c0_3] : memref<1x32xf32, #tpu.memory_space<vmem>>, vector<1x32xf32>
    %7 = arith.addf %5, %6 : vector<1x32xf32>
    %c0_4 = arith.constant 0 : index
    %c0_5 = arith.constant 0 : index
    %8 = vector.load %arg5[%c0_4, %c0_5] : memref<1x32xf32, #tpu.memory_space<vmem>>, vector<1x32xf32>
    %c0_6 = arith.constant 0 : index
    %c0_7 = arith.constant 0 : index
    %9 = vector.load %arg6[%c0_6, %c0_7] : memref<1x32xf32, #tpu.memory_space<vmem>>, vector<1x32xf32>
    %cst_8 = arith.constant dense<0.000000e+00> : vector<1xf32>
    %10 = vector.multi_reduction <add>, %7, %cst_8 [1] : vector<1x32xf32> to vector<1xf32>
    %11 = vector.shape_cast %10 : vector<1xf32> to vector<1x1xf32>
    %cst_9 = arith.constant 3.200000e+01 : f32
    %12 = vector.broadcast %cst_9 : f32 to vector<1x1xf32>
    %13 = arith.divf %11, %12 : vector<1x1xf32>
    %14 = vector.broadcast %13 : vector<1x1xf32> to vector<1x32xf32>
    %15 = arith.subf %7, %14 : vector<1x32xf32>
    %16 = arith.mulf %15, %15 : vector<1x32xf32>
    %cst_10 = arith.constant dense<0.000000e+00> : vector<1xf32>
    %17 = vector.multi_reduction <add>, %16, %cst_10 [1] : vector<1x32xf32> to vector<1xf32>
    %18 = vector.shape_cast %17 : vector<1xf32> to vector<1x1xf32>
    %cst_11 = arith.constant 3.200000e+01 : f32
    %19 = vector.broadcast %cst_11 : f32 to vector<1x1xf32>
    %20 = arith.divf %18, %19 : vector<1x1xf32>
    %21 = vector.broadcast %13 : vector<1x1xf32> to vector<1x32xf32>
    %22 = arith.subf %7, %21 : vector<1x32xf32>
    %cst_12 = arith.constant 9.99999974E-6 : f32
    %23 = vector.broadcast %cst_12 : f32 to vector<1x1xf32>
    %24 = arith.addf %20, %23 : vector<1x1xf32>
    %25 = math.rsqrt %24 : vector<1x1xf32>
    %26 = vector.broadcast %25 : vector<1x1xf32> to vector<1x32xf32>
    %27 = arith.mulf %22, %26 : vector<1x32xf32>
    %28 = arith.mulf %27, %8 : vector<1x32xf32>
    %29 = arith.addf %28, %9 : vector<1x32xf32>
    %30 = arith.truncf %29 : vector<1x32xf32> to vector<1x32xbf16>
    %c0_13 = arith.constant 0 : index
    %c0_14 = arith.constant 0 : index
    %31 = vector.load %arg7[%c0_13, %c0_14] : memref<32x32xbf16, #tpu.memory_space<vmem>>, vector<32x32xbf16>
    %cst_15 = arith.constant dense<0.000000e+00> : vector<1x32xf32>
    %32 = tpu.matmul %30, %31, %cst_15 {dimension_numbers = #tpu.dot_dimension_numbers<[1], [0], [0], [1], [0, 0, 1, 1], [], []>} : vector<1x32xbf16>, vector<32x32xbf16>, vector<1x32xf32> -> vector<1x32xf32>
    %c0_16 = arith.constant 0 : index
    %c0_17 = arith.constant 0 : index
    %33 = vector.load %arg8[%c0_16, %c0_17] : memref<1x32xf32, #tpu.memory_space<vmem>>, vector<1x32xf32>
    %34 = arith.addf %32, %33 : vector<1x32xf32>
    %35 = arith.truncf %34 : vector<1x32xf32> to vector<1x32xbf16>
    %c0_18 = arith.constant 0 : index
    %c0_19 = arith.constant 0 : index
    %36 = vector.load %arg9[%c0_18, %c0_19] : memref<32x32xbf16, #tpu.memory_space<vmem>>, vector<32x32xbf16>
    %cst_20 = arith.constant dense<0.000000e+00> : vector<1x32xf32>
    %37 = tpu.matmul %35, %36, %cst_20 {dimension_numbers = #tpu.dot_dimension_numbers<[1], [0], [0], [1], [0, 0, 1, 1], [], []>} : vector<1x32xbf16>, vector<32x32xbf16>, vector<1x32xf32> -> vector<1x32xf32>
    %c0_21 = arith.constant 0 : index
    %c0_22 = arith.constant 0 : index
    %38 = vector.load %arg10[%c0_21, %c0_22] : memref<1x32xf32, #tpu.memory_space<vmem>>, vector<1x32xf32>
    %39 = arith.addf %37, %38 : vector<1x32xf32>
    %c0_23 = arith.constant 0 : index
    %c0_24 = arith.constant 0 : index
    %c0_25 = arith.constant 0 : index
    %40 = vector.load %arg1[%c0_23, %c0_24, %c0_25] : memref<1x64x32xf32, #tpu.memory_space<vmem>>, vector<1x64x32xf32>
    %41 = vector.shape_cast %39 : vector<1x32xf32> to vector<1x1x32xf32>
    %42 = vector.broadcast %41 : vector<1x1x32xf32> to vector<1x64x32xf32>
    %43 = arith.addf %40, %42 : vector<1x64x32xf32>
    %44 = vector.shape_cast %43 : vector<1x64x32xf32> to vector<64x32xf32>
    %c0_26 = arith.constant 0 : index
    %c0_27 = arith.constant 0 : index
    %45 = vector.load %arg11[%c0_26, %c0_27] : memref<1x32xf32, #tpu.memory_space<vmem>>, vector<1x32xf32>
    %c0_28 = arith.constant 0 : index
    %c0_29 = arith.constant 0 : index
    %46 = vector.load %arg12[%c0_28, %c0_29] : memref<1x32xf32, #tpu.memory_space<vmem>>, vector<1x32xf32>
    %cst_30 = arith.constant dense<0.000000e+00> : vector<64xf32>
    %47 = vector.multi_reduction <add>, %44, %cst_30 [1] : vector<64x32xf32> to vector<64xf32>
    %48 = vector.shape_cast %47 : vector<64xf32> to vector<64x1xf32>
    %cst_31 = arith.constant 3.200000e+01 : f32
    %49 = vector.broadcast %cst_31 : f32 to vector<64x1xf32>
    %50 = arith.divf %48, %49 : vector<64x1xf32>
    %51 = vector.broadcast %50 : vector<64x1xf32> to vector<64x32xf32>
    %52 = arith.subf %44, %51 : vector<64x32xf32>
    %53 = arith.mulf %52, %52 : vector<64x32xf32>
    %cst_32 = arith.constant dense<0.000000e+00> : vector<64xf32>
    %54 = vector.multi_reduction <add>, %53, %cst_32 [1] : vector<64x32xf32> to vector<64xf32>
    %55 = vector.shape_cast %54 : vector<64xf32> to vector<64x1xf32>
    %cst_33 = arith.constant 3.200000e+01 : f32
    %56 = vector.broadcast %cst_33 : f32 to vector<64x1xf32>
    %57 = arith.divf %55, %56 : vector<64x1xf32>
    %58 = vector.broadcast %50 : vector<64x1xf32> to vector<64x32xf32>
    %59 = arith.subf %44, %58 : vector<64x32xf32>
    %cst_34 = arith.constant 9.99999974E-6 : f32
    %60 = vector.broadcast %cst_34 : f32 to vector<64x1xf32>
    %61 = arith.addf %57, %60 : vector<64x1xf32>
    %62 = math.rsqrt %61 : vector<64x1xf32>
    %63 = vector.broadcast %62 : vector<64x1xf32> to vector<64x32xf32>
    %64 = arith.mulf %59, %63 : vector<64x32xf32>
    %65 = vector.broadcast %45 : vector<1x32xf32> to vector<64x32xf32>
    %66 = arith.mulf %64, %65 : vector<64x32xf32>
    %67 = vector.broadcast %46 : vector<1x32xf32> to vector<64x32xf32>
    %68 = arith.addf %66, %67 : vector<64x32xf32>
    %69 = arith.truncf %68 : vector<64x32xf32> to vector<64x32xbf16>
    %c0_35 = arith.constant 0 : index
    %c0_36 = arith.constant 0 : index
    %70 = vector.load %arg13[%c0_35, %c0_36] : memref<32x32xbf16, #tpu.memory_space<vmem>>, vector<32x32xbf16>
    %cst_37 = arith.constant dense<0.000000e+00> : vector<64x32xf32>
    %71 = tpu.matmul %69, %70, %cst_37 {dimension_numbers = #tpu.dot_dimension_numbers<[1], [0], [0], [1], [0, 0, 1, 1], [], []>} : vector<64x32xbf16>, vector<32x32xbf16>, vector<64x32xf32> -> vector<64x32xf32>
    %c0_38 = arith.constant 0 : index
    %c0_39 = arith.constant 0 : index
    %72 = vector.load %arg14[%c0_38, %c0_39] : memref<1x32xf32, #tpu.memory_space<vmem>>, vector<1x32xf32>
    %73 = vector.broadcast %72 : vector<1x32xf32> to vector<64x32xf32>
    %74 = arith.addf %71, %73 : vector<64x32xf32>
    %cst_40 = arith.constant 5.000000e-01 : f32
    %75 = vector.broadcast %cst_40 : f32 to vector<64x32xf32>
    %76 = arith.mulf %75, %74 : vector<64x32xf32>
    %cst_41 = arith.constant 0.707106769 : f32
    %77 = vector.broadcast %cst_41 : f32 to vector<64x32xf32>
    %78 = arith.mulf %74, %77 : vector<64x32xf32>
    %79 = math.erf %78 : vector<64x32xf32>
    %cst_42 = arith.constant 1.000000e+00 : f32
    %80 = vector.broadcast %cst_42 : f32 to vector<64x32xf32>
    %81 = arith.addf %80, %79 : vector<64x32xf32>
    %82 = arith.mulf %76, %81 : vector<64x32xf32>
    %83 = arith.truncf %82 : vector<64x32xf32> to vector<64x32xbf16>
    %c0_43 = arith.constant 0 : index
    %c0_44 = arith.constant 0 : index
    %84 = vector.load %arg15[%c0_43, %c0_44] : memref<32x32xbf16, #tpu.memory_space<vmem>>, vector<32x32xbf16>
    %cst_45 = arith.constant dense<0.000000e+00> : vector<64x32xf32>
    %85 = tpu.matmul %83, %84, %cst_45 {dimension_numbers = #tpu.dot_dimension_numbers<[1], [0], [0], [1], [0, 0, 1, 1], [], []>} : vector<64x32xbf16>, vector<32x32xbf16>, vector<64x32xf32> -> vector<64x32xf32>
    %c0_46 = arith.constant 0 : index
    %c0_47 = arith.constant 0 : index
    %86 = vector.load %arg16[%c0_46, %c0_47] : memref<1x32xf32, #tpu.memory_space<vmem>>, vector<1x32xf32>
    %87 = vector.broadcast %86 : vector<1x32xf32> to vector<64x32xf32>
    %88 = arith.addf %85, %87 : vector<64x32xf32>
    %89 = arith.addf %88, %44 : vector<64x32xf32>
    %90 = vector.shape_cast %89 : vector<64x32xf32> to vector<1x64x32xf32>
    %c0_48 = arith.constant 0 : index
    %c0_49 = arith.constant 0 : index
    %c0_50 = arith.constant 0 : index
    %91 = vector.load %arg17[%c0_48, %c0_49, %c0_50] : memref<1x64x32xf32, #tpu.memory_space<vmem>>, vector<1x64x32xf32>
    tpu.vector_store %arg17[%c0_48, %c0_49, %c0_50], %90 {strides = array<i32>} : memref<1x64x32xf32, #tpu.memory_space<vmem>>, vector<1x64x32xf32>,
    return
  }
  func.func @transform_0(%arg0: i32) -> (i32, i32, i32) {
    %c0_i32 = arith.constant 0 : i32
    %c0_i32_0 = arith.constant 0 : i32
    %c0_i32_1 = arith.constant 0 : i32
    return %arg0, %c0_i32, %c0_i32_0 : i32, i32, i32
  }
  func.func @transform_1(%arg0: i32) -> (i32, i32) {
    %c0_i32 = arith.constant 0 : i32
    %c0_i32_0 = arith.constant 0 : i32
    %c0_i32_1 = arith.constant 0 : i32
    return %c0_i32, %c0_i32_0 : i32, i32
  }
  func.func @transform_2(%arg0: i32) -> (i32, i32) {
    %c0_i32 = arith.constant 0 : i32
    %c0_i32_0 = arith.constant 0 : i32
    %c0_i32_1 = arith.constant 0 : i32
    return %c0_i32, %c0_i32_0 : i32, i32
  }
  func.func @transform_3(%arg0: i32) -> (i32, i32) {
    %c0_i32 = arith.constant 0 : i32
    %c0_i32_0 = arith.constant 0 : i32
    %c0_i32_1 = arith.constant 0 : i32
    return %c0_i32, %c0_i32_0 : i32, i32
  }
  func.func @transform_4(%arg0: i32) -> (i32, i32) {
    %c0_i32 = arith.constant 0 : i32
    %c0_i32_0 = arith.constant 0 : i32
    %c0_i32_1 = arith.constant 0 : i32
    return %c0_i32, %c0_i32_0 : i32, i32
  }
  func.func @transform_5(%arg0: i32) -> (i32, i32) {
    %c0_i32 = arith.constant 0 : i32
    %c0_i32_0 = arith.constant 0 : i32
    %c0_i32_1 = arith.constant 0 : i32
    return %c0_i32, %c0_i32_0 : i32, i32
  }
  func.func @transform_6(%arg0: i32) -> (i32, i32) {
    %c0_i32 = arith.constant 0 : i32
    %c0_i32_0 = arith.constant 0 : i32
    %c0_i32_1 = arith.constant 0 : i32
    return %c0_i32, %c0_i32_0 : i32, i32
  }
  func.func @transform_7(%arg0: i32) -> (i32, i32) {
    %c0_i32 = arith.constant 0 : i32
    %c0_i32_0 = arith.constant 0 : i32
    %c0_i32_1 = arith.constant 0 : i32
    return %c0_i32, %c0_i32_0 : i32, i32
  }
  func.func @transform_8(%arg0: i32) -> (i32, i32) {
    %c0_i32 = arith.constant 0 : i32
    %c0_i32_0 = arith.constant 0 : i32
    %c0_i32_1 = arith.constant 0 : i32
    return %c0_i32, %c0_i32_0 : i32, i32
  }
  func.func @transform_9(%arg0: i32) -> (i32, i32) {
    %c0_i32 = arith.constant 0 : i32
    %c0_i32_0 = arith.constant 0 : i32
    %c0_i32_1 = arith.constant 0 : i32
    return %c0_i32, %c0_i32_0 : i32, i32
  }
  func.func @transform_10(%arg0: i32) -> (i32, i32) {
    %c0_i32 = arith.constant 0 : i32
    %c0_i32_0 = arith.constant 0 : i32
    %c0_i32_1 = arith.constant 0 : i32
    return %c0_i32, %c0_i32_0 : i32, i32
  }
  func.func @transform_11(%arg0: i32) -> (i32, i32) {
    %c0_i32 = arith.constant 0 : i32
    %c0_i32_0 = arith.constant 0 : i32
    %c0_i32_1 = arith.constant 0 : i32
    return %c0_i32, %c0_i32_0 : i32, i32
  }
  func.func @transform_12(%arg0: i32) -> (i32, i32) {
    %c0_i32 = arith.constant 0 : i32
    %c0_i32_0 = arith.constant 0 : i32
    %c0_i32_1 = arith.constant 0 : i32
    return %c0_i32, %c0_i32_0 : i32, i32
  }
  func.func @transform_13(%arg0: i32) -> (i32, i32) {
    %c0_i32 = arith.constant 0 : i32
    %c0_i32_0 = arith.constant 0 : i32
    %c0_i32_1 = arith.constant 0 : i32
    return %c0_i32, %c0_i32_0 : i32, i32
  }
  func.func @transform_14(%arg0: i32) -> (i32, i32) {
    %c0_i32 = arith.constant 0 : i32
    %c0_i32_0 = arith.constant 0 : i32
    %c0_i32_1 = arith.constant 0 : i32
    return %c0_i32, %c0_i32_0 : i32, i32
  }
  func.func @transform_15(%arg0: i32) -> (i32, i32) {
    %c0_i32 = arith.constant 0 : i32
    %c0_i32_0 = arith.constant 0 : i32
    %c0_i32_1 = arith.constant 0 : i32
    return %c0_i32, %c0_i32_0 : i32, i32
  }
  func.func @transform_16(%arg0: i32) -> (i32, i32, i32) {
    %c0_i32 = arith.constant 0 : i32
    %c0_i32_0 = arith.constant 0 : i32
    %c0_i32_1 = arith.constant 0 : i32
    return %arg0, %c0_i32, %c0_i32_0 : i32, i32, i32
  }
}

</mosaic_0001>

<bundles_post_ra>
// kernel: tpu_custom_call.1
= control target key start
LH: loop header
LB: loop body
LE: loop exit
PB: predicated region body
PF: predicated region fallthrough
CT: control target
= control target key end

     0   :  { %s1446_s21 = smov 0   ;;  %s1656_s0 = inlined_call_operand.vmem [shape: f32[2,64,32], index: 0, kind: input, shape index: {}]   ;;  %s1657_s1 = inlined_call_operand.vmem [shape: f32[2,16], index: 1, kind: input, shape index: {}]   ;;  %s1658_s2 = inlined_call_operand.vmem [shape: bf16[16,32], index: 2, kind: input, shape index: {}]   ;;  %s1659_s3 = inlined_call_operand.vmem [shape: f32[1,32], index: 3, kind: input, shape index: {}]   ;;  %s1660_s4 = inlined_call_operand.vmem [shape: f32[1,32], index: 4, kind: input, shape index: {}]   ;;  %s1661_s5 = inlined_call_operand.vmem [shape: f32[1,32], index: 5, kind: input, shape index: {}]   ;;  %s1662_s6 = inlined_call_operand.vmem [shape: bf16[32,32], index: 6, kind: input, shape index: {}]   ;;  %s1663_s7 = inlined_call_operand.vmem [shape: f32[1,32], index: 7, kind: input, shape index: {}]   ;;  %s1664_s8 = inlined_call_operand.vmem [shape: bf16[32,32], index: 8, kind: input, shape index: {}]   ;;  %s1665_s9 = inlined_call_operand.vmem [shape: f32[1,32], index: 9, kind: input, shape index: {}]   ;;  %s1666_s10 = inlined_call_operand.vmem [shape: f32[1,32], index: 10, kind: input, shape index: {}]   ;;  %s1667_s11 = inlined_call_operand.vmem [shape: f32[1,32], index: 11, kind: input, shape index: {}]   ;;  %s1668_s12 = inlined_call_operand.vmem [shape: bf16[32,32], index: 12, kind: input, shape index: {}]   ;;  %s1669_s13 = inlined_call_operand.vmem [shape: f32[1,32], index: 13, kind: input, shape index: {}]   ;;  %s1670_s14 = inlined_call_operand.vmem [shape: bf16[32,32], index: 14, kind: input, shape index: {}]   ;;  %s1671_s15 = inlined_call_operand.vmem [shape: f32[1,32], index: 15, kind: input, shape index: {}]   ;;  %s1672_s16 = inlined_call_operand.vmem [shape: f32[2,64,32], index: 16, kind: output, shape index: {}]  }
   0x1   :  { %1673 = sst [smem:[#allocation2_spill]] %s1656_s0 }
   0x2 LB: > { %s1452_s22 = sadd.s32 4294967295, %s1357_s21   ;;  %p1199_p0 = scmp.ge.s32.totalorder %s1357_s21, 1  ;;  %s1357_s21 = sphi %s1446_s21, %s26_s21  }
   0x3   : > { %p462_p1 = scmp.lt.s32.totalorder %s1357_s21, 3 }
   0x5   : > { %p463_p2 = pnand %p1199_p0, %p462_p1 }
   0x6   : > { %s523_s27 = scalar_lea.vmem (!%p463_p2), %s1657_s1, %s1452_s22  ;;  %p512_p3 = scmp.lt.s32.totalorder (!%p463_p2), %s1452_s22, 1 }
   0x7   : > { %466 = sbr.rel (%p463_p2) target bundleno = 1673 (0x689), region = 84  ;;  %s1674_s23 = sld [smem:[#allocation2_spill]] (!%p463_p2) }
   0xc   : > { %v1308_v0 = vld [vmem:[%s1658_s2] sm:$0xff]   ;;  %v1359_v1 = vmov 0.0   ;;  %vm535_vm0 = vcmask 130048   ;;  %vm1360_vm1 = vmmov 0   ;;  %vm581_vm2 = vcmask 253952   ;;  %v1309_v16 = vld [vmem:[%s1662_s6 + $0x8] sm:$0xff]  }
   0xd   : > { %1252 = vmatprep.subr.bf16.mxu0 %v1359_v1  ;;  %v524_v2 = vld [vmem:[%s523_s27] sm:$0x1]  ;;  %1258 = vmatprep.subr.bf16.mxu1 %v1359_v1  ;;  %v1311_v18 = vld [vmem:[%s1664_s8 + $0x8] sm:$0xff]   ;;  %vm616_vm3 = vcmask 261120   ;;  %v729_v37 = vlaneseq  ;;  %s1676_s22 = smov (!%p512_p3, %s1452_s22), 1 }
   0xe   : > { %1253 = vmatpush3.bf16.msra.mxu0 %v1308_v0  ;;  %1254 = vmatprep.mubr.msk.bf16.mxu0 %vm1360_vm1, %v1359_v1  ;;  %v525_v3 = vpack.c.bf16 %v524_v2, %v524_v2  ;;  %v528_v4 = vld [vmem:[%s1659_s3] sm:$0x1]  ;;  %s1230_s0 = sshll.u32 %s1676_s22, 6 }
   0xf   : > { %1262 = vmatprep.mubr.msk.bf16.mxu1 %vm1360_vm1, %v1359_v1  ;;  %1266 = vmatprep.subr.bf16.mxu0 %v1359_v1  ;;  %v1310_v17 = vld [vmem:[%s1662_s6] sm:$0xff]   ;;  %v730_v38 = vshrl.u32 %v729_v37, 7  ;;  %s1502_s24 = scalar_lea.vmem %s1674_s23, %s1230_s0  ;;  %s521_s17 = scalar_lea.vmem %s1672_s16, %s1230_s0 }
  0x10   : > { %1259 = vmatpush3.bf16.msra.mxu1 %v1309_v16  ;;  %v579_v23 = vld [vmem:[%s1660_s4] sm:$0x1]  ;;  %v723_v44 = vld [vmem:[%s1502_s24 + $0x10] sm:$0xff]  ;;  %v722_v49 = vld [vmem:[%s1502_s24 + $0x8] sm:$0xff] }
  0x11   : > { %1255 = vmatmul.mubr.msk.bf16.vlgmr.msra.gmra.mxu0 %vm535_vm0, %v525_v3  ;;  %1260 = vmatprep.subr.bf16.mxu1 %v1359_v1  ;;  %v580_v25 = vld [vmem:[%s1661_s5] sm:$0x1]  ;;  %v731_v40 = vsub.s32 0, %v730_v38  ;;  %v727_v57 = vld [vmem:[%s1502_s24 + $0x30] sm:$0xff]  ;;  %v724_v58 = vld [vmem:[%s1502_s24 + $0x18] sm:$0xff] }
  0x12   : > { %1270 = vmatprep.mubr.msk.bf16.mxu0 %vm1360_vm1, %v1359_v1  ;;  %1267 = vmatpush3.bf16.msra.mxu0 %v1311_v18  ;;  %v1312_v29 = vld [vmem:[%s1664_s8] sm:$0xff]   ;;  %v726_v63 = vld [vmem:[%s1502_s24 + $0x28] sm:$0xff]  ;;  %v728_v3 = vld [vmem:[%s1502_s24 + $0x38] sm:$0xff] }
  0x13   : > { %1268 = vmatprep.subr.bf16.mxu0 %v1359_v1  ;;  %v603_v30 = vld [vmem:[%s1663_s7] sm:$0x1] }
  0x14   : > { %1261 = vmatpush3.bf16.msra.mxu1 %v1310_v17  ;;  %v665_v39 = vld [vmem:[%s1665_s9] sm:$0x1] }
  0x15   : > { %v721_v45 = vld [vmem:[%s1502_s24] sm:$0xff] }
  0x16   : > { %1269 = vmatpush3.bf16.msra.mxu0 %v1312_v29  ;;  %v725_v48 = vld [vmem:[%s1502_s24 + $0x20] sm:$0xff] }
  0xd1   : > { %v573_v5 = vpop.f32.mrf.mxu0 }
  0xd2   : > { %v574_v6 = vadd.f32 %v573_v5, %v528_v4 }
  0xd3   : > { %v1256_v7 = vpop.f32.mrf.mxu0 }
  0xd4   : > { %v582_v8 = vsel %vm581_vm2, %v574_v6, 0.0 }
  0xd5   : > { %583 = vadd.xlane.f32.xlu0 %v582_v8  ;;  %v576_v9 = vpop.f32.mrf.mxu0 }
  0xd7   : > { %v1257_v10 = vpop.f32.mrf.mxu0 }
 0x15e   : > { %v584_v11 = vpop.xlane.xlu0 %583 }
 0x15f   : > { %v586_v12 = vmul.f32 0.03125, %v584_v11 }
 0x161   : > { %v587_v13 = vsub.f32 %v574_v6, %v586_v12 }
 0x163   : > { %v588_v14 = vmul.f32 %v587_v13, %v587_v13 }
 0x165   : > { %v589_v15 = vsel %vm581_vm2, %v588_v14, 0.0 }
 0x166   : > { %590 = vadd.xlane.f32.xlu0 %v589_v15 }
 0x1ef   : > { %v591_v19 = vpop.xlane.xlu0 %590 }
 0x1f0   : > { %v592_v20 = vmul.f32 0.03125, %v591_v19 }
 0x1f2   : > { %v593_v21 = vadd.f32 1e-05, %v592_v20 }
 0x1f4   : > { %1317 = vrsqrt.f32 %v593_v21 }
 0x201   : > { %v1318_v22 = vpop.eup %1317 }
 0x202   : > { %v595_v24 = vmul.f32 %v1318_v22, %v587_v13 }
 0x204   : > { %v596_v26 = vmul.f32 %v595_v24, %v579_v23 }
 0x206   : > { %v597_v27 = vadd.f32 %v596_v26, %v580_v25 }
 0x208   : > { %v598_v28 = vpack.c.bf16 %v597_v27, %v597_v27 }
 0x20a   : > { %1263 = vmatmul.mubr.msk.bf16.vlgmr.msra.gmra.mxu1 %vm616_vm3, %v598_v28 }
 0x2ca   : > { %v654_v31 = vpop.f32.mrf.mxu1 }
 0x2cb   : > { %v655_v32 = vadd.f32 %v654_v31, %v603_v30 }
 0x2cc   : > { %v1264_v33 = vpop.f32.mrf.mxu1 }
 0x2cd   : > { %v660_v34 = vpack.c.bf16 %v655_v32, %v655_v32 }
 0x2ce   : > { %v657_v35 = vpop.f32.mrf.mxu1 }
 0x2cf   : > { %1271 = vmatmul.mubr.msk.bf16.vlgmr.msra.gmra.mxu0 %vm616_vm3, %v660_v34 }
 0x2d0   : > { %v1265_v36 = vpop.f32.mrf.mxu1 }
 0x38f   : > { %v715_v41 = vpop.f32.mrf.mxu0 }
 0x390   : > { %v716_v42 = vadd.f32 %v715_v41, %v665_v39 }
 0x391   : > { %v1272_v43 = vpop.f32.mrf.mxu0 }
 0x392   : > { %v732_v46 = vrot.slane %v716_v42, %v731_v40 }
 0x393   : > { %v718_v47 = vpop.f32.mrf.mxu0 }
 0x394   : > { %v1508_v50 = vadd.f32 %v732_v46, %v723_v44  ;;  %v1510_v51 = vadd.f32 %v732_v46, %v721_v45  ;;  %v1516_v55 = vadd.f32 %v732_v46, %v725_v48  ;;  %v1518_v56 = vadd.f32 %v732_v46, %v722_v49  ;;  %v1313_v47 = vld [vmem:[%s1668_s12 + $0x8] sm:$0xff]   ;;  %v1314_v48 = vld [vmem:[%s1668_s12] sm:$0xff]  }
 0x395   : > { %v1273_v52 = vpop.f32.mrf.mxu0  ;;  %v1526_v61 = vadd.f32 %v732_v46, %v727_v57  ;;  %v1528_v62 = vadd.f32 %v732_v46, %v724_v58  ;;  %v1535_v2 = vadd.f32 %v732_v46, %v726_v63  ;;  %v1540_v5 = vadd.f32 %v732_v46, %v728_v3  ;;  %1274 = vmatprep.subr.bf16.mxu1 %v1313_v47 }
 0x396   : > { %v749_v53 = vsel %vm616_vm3, %v1508_v50, 0.0  ;;  %v743_v54 = vsel %vm616_vm3, %v1510_v51, 0.0  ;;  %v755_v59 = vsel %vm616_vm3, %v1516_v55, 0.0  ;;  %v746_v60 = vsel %vm616_vm3, %v1518_v56, 0.0  ;;  %1275 = vmatpush3.bf16.msra.mxu1 %v1313_v47 }
 0x397   : > { %750 = vadd.xlane.f32.xlu0 %v749_v53  ;;  %744 = vadd.xlane.f32.xlu1 %v743_v54  ;;  %v761_v0 = vsel %vm616_vm3, %v1526_v61, 0.0  ;;  %v752_v1 = vsel %vm616_vm3, %v1528_v62, 0.0  ;;  %v758_v4 = vsel %vm616_vm3, %v1535_v2, 0.0  ;;  %v764_v6 = vsel %vm616_vm3, %v1540_v5, 0.0 }
 0x398   : > { %1276 = vmatprep.subr.bf16.mxu1 %v1314_v48 }
 0x39a   : > { %1277 = vmatpush3.bf16.msra.mxu1 %v1314_v48 }
 0x39b   : > { %756 = vadd.xlane.f32.xlu0 %v755_v59  ;;  %747 = vadd.xlane.f32.xlu1 %v746_v60 }
 0x39f   : > { %762 = vadd.xlane.f32.xlu0 %v761_v0  ;;  %753 = vadd.xlane.f32.xlu1 %v752_v1 }
 0x3a3   : > { %759 = vadd.xlane.f32.xlu1 %v758_v4 }
 0x3a7   : > { %765 = vadd.xlane.f32.xlu1 %v764_v6 }
 0x420   : > { %v751_v7 = vpop.xlane.xlu0 %750  ;;  %v745_v8 = vpop.xlane.xlu1 %744 }
 0x421   : > { %v769_v9 = vmul.f32 0.03125, %v751_v7  ;;  %v767_v10 = vmul.f32 0.03125, %v745_v8 }
 0x423   : > { %v1545_v11 = vsub.f32 %v1508_v50, %v769_v9  ;;  %v1548_v12 = vsub.f32 %v1510_v51, %v767_v10 }
 0x424   : > { %v757_v13 = vpop.xlane.xlu0 %756  ;;  %v748_v14 = vpop.xlane.xlu1 %747 }
 0x425   : > { %v771_v15 = vmul.f32 0.03125, %v757_v13  ;;  %v768_v16 = vmul.f32 0.03125, %v748_v14  ;;  %v783_v17 = vmul.f32 %v1548_v12, %v1548_v12  ;;  %v785_v18 = vmul.f32 %v1545_v11, %v1545_v11 }
 0x427   : > { %v1555_v19 = vsub.f32 %v1516_v55, %v771_v15  ;;  %v1558_v20 = vsub.f32 %v1518_v56, %v768_v16  ;;  %v791_v21 = vsel %vm616_vm3, %v783_v17, 0.0  ;;  %v797_v27 = vsel %vm616_vm3, %v785_v18, 0.0 }
 0x428   : > { %v763_v22 = vpop.xlane.xlu0 %762  ;;  %792 = vadd.xlane.f32.xlu0 %v791_v21  ;;  %v754_v23 = vpop.xlane.xlu1 %753 }
 0x429   : > { %v773_v24 = vmul.f32 0.03125, %v763_v22  ;;  %v770_v25 = vmul.f32 0.03125, %v754_v23  ;;  %v784_v26 = vmul.f32 %v1558_v20, %v1558_v20  ;;  %v787_v31 = vmul.f32 %v1555_v19, %v1555_v19  ;;  %v1212_v23 = vld [vmem:[%s1666_s10] ss:$0 sm:$0xff] }
 0x42b   : > { %v1565_v28 = vsub.f32 %v1526_v61, %v773_v24  ;;  %v1568_v29 = vsub.f32 %v1528_v62, %v770_v25  ;;  %v794_v30 = vsel %vm616_vm3, %v784_v26, 0.0  ;;  %v803_v36 = vsel %vm616_vm3, %v787_v31, 0.0 }
 0x42c   : > { %798 = vadd.xlane.f32.xlu0 %v797_v27  ;;  %795 = vadd.xlane.f32.xlu1 %v794_v30  ;;  %v760_v32 = vpop.xlane.xlu1 %759  ;;  %v1213_v30 = vld [vmem:[%s1667_s11] ss:$0 sm:$0xff] }
 0x42d   : > { %v772_v33 = vmul.f32 0.03125, %v760_v32  ;;  %v786_v34 = vmul.f32 %v1568_v29, %v1568_v29  ;;  %v789_v38 = vmul.f32 %v1565_v28, %v1565_v28 }
 0x42f   : > { %v1576_v35 = vsub.f32 %v1535_v2, %v772_v33  ;;  %v800_v37 = vsel %vm616_vm3, %v786_v34, 0.0  ;;  %v809_v43 = vsel %vm616_vm3, %v789_v38, 0.0 }
 0x430   : > { %804 = vadd.xlane.f32.xlu0 %v803_v36  ;;  %801 = vadd.xlane.f32.xlu1 %v800_v37  ;;  %v766_v39 = vpop.xlane.xlu1 %765 }
 0x431   : > { %v774_v40 = vmul.f32 0.03125, %v766_v39  ;;  %v788_v41 = vmul.f32 %v1576_v35, %v1576_v35 }
 0x433   : > { %v1585_v42 = vsub.f32 %v1540_v5, %v774_v40  ;;  %v806_v44 = vsel %vm616_vm3, %v788_v41, 0.0 }
 0x434   : > { %810 = vadd.xlane.f32.xlu0 %v809_v43  ;;  %807 = vadd.xlane.f32.xlu1 %v806_v44 }
 0x435   : > { %v790_v45 = vmul.f32 %v1585_v42, %v1585_v42 }
 0x437   : > { %v812_v46 = vsel %vm616_vm3, %v790_v45, 0.0 }
 0x438   : > { %813 = vadd.xlane.f32.xlu1 %v812_v46 }
 0x4b1   : > { %v793_v49 = vpop.xlane.xlu0 %792 }
 0x4b2   : > { %v815_v52 = vmul.f32 0.03125, %v793_v49 }
 0x4b4   : > { %v823_v53 = vadd.f32 1e-05, %v815_v52 }
 0x4b5   : > { %v799_v54 = vpop.xlane.xlu0 %798  ;;  %v796_v57 = vpop.xlane.xlu1 %795 }
 0x4b6   : > { %1319 = vrsqrt.f32 %v823_v53  ;;  %v817_v58 = vmul.f32 0.03125, %v799_v54  ;;  %v816_v59 = vmul.f32 0.03125, %v796_v57 }
 0x4b8   : > { %v825_v60 = vadd.f32 1e-05, %v817_v58  ;;  %v824_v63 = vadd.f32 1e-05, %v816_v59 }
 0x4b9   : > { %v805_v0 = vpop.xlane.xlu0 %804  ;;  %v802_v1 = vpop.xlane.xlu1 %801 }
 0x4ba   : > { %1321 = vrsqrt.f32 %v825_v60  ;;  %v819_v3 = vmul.f32 0.03125, %v805_v0  ;;  %v818_v4 = vmul.f32 0.03125, %v802_v1 }
 0x4bb   : > { %1323 = vrsqrt.f32 %v824_v63  ;;  %v1214_v63 = vld [vmem:[%s1669_s13] ss:$0 sm:$0xff] }
 0x4bc   : > { %v827_v6 = vadd.f32 1e-05, %v819_v3  ;;  %v826_v7 = vadd.f32 1e-05, %v818_v4 }
 0x4bd   : > { %v811_v8 = vpop.xlane.xlu0 %810  ;;  %v808_v9 = vpop.xlane.xlu1 %807 }
 0x4be   : > { %1325 = vrsqrt.f32 %v827_v6  ;;  %v821_v10 = vmul.f32 0.03125, %v811_v8  ;;  %v820_v13 = vmul.f32 0.03125, %v808_v9 }
 0x4bf   : > { %1327 = vrsqrt.f32 %v826_v7 }
 0x4c0   : > { %v829_v14 = vadd.f32 1e-05, %v821_v10  ;;  %v828_v15 = vadd.f32 1e-05, %v820_v13 }
 0x4c1   : > { %v814_v16 = vpop.xlane.xlu1 %813 }
 0x4c2   : > { %1329 = vrsqrt.f32 %v829_v14  ;;  %v822_v17 = vmul.f32 0.03125, %v814_v16 }
 0x4c3   : > { %v1320_v18 = vpop.eup %1319  ;;  %1331 = vrsqrt.f32 %v828_v15 }
 0x4c4   : > { %v830_v21 = vadd.f32 1e-05, %v822_v17  ;;  %v839_v22 = vmul.f32 %v1320_v18, %v1548_v12 }
 0x4c6   : > { %1333 = vrsqrt.f32 %v830_v21  ;;  %v853_v26 = vmul.f32 %v1212_v23, %v839_v22 }
 0x4c7   : > { %v1322_v24 = vpop.eup %1321 }
 0x4c8   : > { %v1324_v25 = vpop.eup %1323  ;;  %v841_v27 = vmul.f32 %v1322_v24, %v1545_v11  ;;  %v867_v12 = vadd.f32 %v1213_v30, %v853_v26 }
 0x4c9   : > { %v840_v31 = vmul.f32 %v1324_v25, %v1558_v20 }
 0x4ca   : > { %v855_v38 = vmul.f32 %v1212_v23, %v841_v27 }
 0x4cb   : > { %v1326_v32 = vpop.eup %1325  ;;  %v854_v33 = vmul.f32 %v1212_v23, %v840_v31 }
 0x4cc   : > { %v1328_v34 = vpop.eup %1327  ;;  %v843_v39 = vmul.f32 %v1326_v32, %v1555_v19  ;;  %v869_v45 = vadd.f32 %v1213_v30, %v855_v38 }
 0x4cd   : > { %v842_v36 = vmul.f32 %v1328_v34, %v1568_v29  ;;  %v868_v37 = vadd.f32 %v1213_v30, %v854_v33 }
 0x4ce   : > { %v857_v47 = vmul.f32 %v1212_v23, %v843_v39 }
 0x4cf   : > { %v1330_v40 = vpop.eup %1329  ;;  %v875_v41 = vpack.c.bf16 %v868_v37, %v867_v12  ;;  %v856_v43 = vmul.f32 %v1212_v23, %v842_v36 }
 0x4d0   : > { %v1332_v11 = vpop.eup %1331  ;;  %v845_v44 = vmul.f32 %v1330_v40, %v1565_v28  ;;  %v871_v19 = vadd.f32 %v1213_v30, %v857_v47 }
 0x4d1   : > { %1278 = vmatprep.mubr.msk.bf16.mxu1 %vm616_vm3, %v875_v41  ;;  %v870_v20 = vadd.f32 %v1213_v30, %v856_v43  ;;  %v844_v46 = vmul.f32 %v1332_v11, %v1576_v35  ;;  %v1315_v35 = vld [vmem:[%s1670_s14 + $0x8] sm:$0xff]  }
 0x4d2   : > { %v859_v53 = vmul.f32 %v1212_v23, %v845_v44  ;;  %1286 = vmatprep.subr.bf16.mxu0 %v1315_v35 }
 0x4d3   : > { %v1334_v48 = vpop.eup %1333  ;;  %v876_v49 = vpack.c.bf16 %v870_v20, %v869_v45  ;;  %v858_v29 = vmul.f32 %v1212_v23, %v844_v46  ;;  %1287 = vmatpush3.bf16.msra.mxu0 %v1315_v35 }
 0x4d4   : > { %v846_v52 = vmul.f32 %v1334_v48, %v1585_v42  ;;  %v873_v28 = vadd.f32 %v1213_v30, %v859_v53  ;;  %v1316_v42 = vld [vmem:[%s1670_s14] sm:$0xff]  }
 0x4d5   : > { %1279 = vmatmul.mubr.msk.bf16.vlgmr.msra.gmra.mxu1 %vm616_vm3, %v876_v49  ;;  %v872_v54 = vadd.f32 %v1213_v30, %v858_v29  ;;  %1288 = vmatprep.subr.bf16.mxu0 %v1316_v42 }
 0x4d6   : > { %v860_v57 = vmul.f32 %v1212_v23, %v846_v52 }
 0x4d7   : > { %v877_v58 = vpack.c.bf16 %v872_v54, %v871_v19  ;;  %1289 = vmatpush3.bf16.msra.mxu0 %v1316_v42 }
 0x4d8   : > { %v874_v59 = vadd.f32 %v1213_v30, %v860_v57 }
 0x4d9   : > { %1282 = vmatprep.mubr.msk.bf16.mxu1 %vm616_vm3, %v877_v58 }
 0x4da   : > { %v878_v60 = vpack.c.bf16 %v874_v59, %v873_v28 }
 0x4dd   : > { %1283 = vmatmul.mubr.msk.bf16.gmra.mxu1 %vm616_vm3, %v878_v60 }
 0x595   : > { %v1280_v0 = vpop.f32.mrf.mxu1 }
 0x596   : > { %v957_v1 = vadd.f32 %v1280_v0, %v1214_v63 }
 0x597   : > { %v948_v3 = vpop.f32.mrf.mxu1 }
 0x598   : > { %v949_v4 = vadd.f32 %v1214_v63, %v948_v3  ;;  %v989_v6 = vmul.f32 0.70710677, %v957_v1  ;;  %v981_v11 = vmul.f32 0.5, %v957_v1 }
 0x599   : > { %v1281_v7 = vpop.f32.mrf.mxu1 }
 0x59a   : > { %v987_v8 = vmul.f32 0.70710677, %v949_v4  ;;  %v960_v9 = vadd.f32 %v1281_v7, %v1214_v63  ;;  %v979_v40 = vmul.f32 0.5, %v949_v4 }
 0x59b   : > { %v951_v10 = vpop.f32.mrf.mxu1 }
 0x59c   : > { %1335 = verf.f32 %v987_v8  ;;  %v990_v13 = vmul.f32 0.70710677, %v960_v9  ;;  %v952_v14 = vadd.f32 %v1214_v63, %v951_v10  ;;  %v982_v39 = vmul.f32 0.5, %v960_v9 }
 0x59d   : > { %1337 = verf.f32 %v989_v6  ;;  %v1284_v15 = vpop.f32.mrf.mxu1  ;;  %v1221_v6 = vld [vmem:[%s1671_s15] ss:$0 sm:$0xff] }
 0x59e   : > { %1339 = verf.f32 %v990_v13  ;;  %v988_v16 = vmul.f32 0.70710677, %v952_v14  ;;  %v973_v17 = vadd.f32 %v1284_v15, %v1214_v63  ;;  %v980_v41 = vmul.f32 0.5, %v952_v14 }
 0x59f   : > { %v964_v18 = vpop.f32.mrf.mxu1 }
 0x5a0   : > { %1341 = verf.f32 %v988_v16  ;;  %v965_v21 = vadd.f32 %v1214_v63, %v964_v18  ;;  %v993_v22 = vmul.f32 0.70710677, %v973_v17  ;;  %v985_v35 = vmul.f32 0.5, %v973_v17 }
 0x5a1   : > { %v1285_v23 = vpop.f32.mrf.mxu1 }
 0x5a2   : > { %v991_v24 = vmul.f32 0.70710677, %v965_v21  ;;  %v976_v25 = vadd.f32 %v1285_v23, %v1214_v63  ;;  %v983_v28 = vmul.f32 0.5, %v965_v21 }
 0x5a3   : > { %v967_v26 = vpop.f32.mrf.mxu1 }
 0x5a4   : > { %1343 = verf.f32 %v991_v24  ;;  %v994_v27 = vmul.f32 0.70710677, %v976_v25  ;;  %v968_v30 = vadd.f32 %v1214_v63, %v967_v26  ;;  %v986_v58 = vmul.f32 0.5, %v976_v25 }
 0x5a5   : > { %1345 = verf.f32 %v993_v22 }
 0x5a6   : > { %1347 = verf.f32 %v994_v27  ;;  %v992_v31 = vmul.f32 0.70710677, %v968_v30  ;;  %v984_v59 = vmul.f32 0.5, %v968_v30 }
 0x5a8   : > { %1349 = verf.f32 %v992_v31 }
 0x5a9   : > { %v1336_v32 = vpop.eup %1335 }
 0x5aa   : > { %v1338_v33 = vpop.eup %1337  ;;  %v1003_v12 = vadd.f32 1.0, %v1336_v32 }
 0x5ab   : > { %v1340_v34 = vpop.eup %1339  ;;  %v1005_v38 = vadd.f32 1.0, %v1338_v33 }
 0x5ac   : > { %v1006_v36 = vadd.f32 1.0, %v1340_v34  ;;  %v1011_v45 = vmul.f32 %v1003_v12, %v979_v40 }
 0x5ad   : > { %v1342_v37 = vpop.eup %1341  ;;  %v1013_v47 = vmul.f32 %v1005_v38, %v981_v11 }
 0x5ae   : > { %v1004_v43 = vadd.f32 1.0, %v1342_v37  ;;  %v1014_v44 = vmul.f32 %v1006_v36, %v982_v39 }
 0x5b0   : > { %v1012_v20 = vmul.f32 %v1004_v43, %v980_v41  ;;  %v1020_v52 = vpack.c.bf16 %v1014_v44, %v1013_v47 }
 0x5b1   : > { %v1344_v46 = vpop.eup %1343 }
 0x5b2   : > { %v1346_v48 = vpop.eup %1345  ;;  %v1019_v49 = vpack.c.bf16 %v1012_v20, %v1011_v45  ;;  %v1007_v53 = vadd.f32 1.0, %v1344_v46 }
 0x5b3   : > { %v1348_v29 = vpop.eup %1347  ;;  %v1009_v57 = vadd.f32 1.0, %v1346_v48 }
 0x5b4   : > { %v1010_v19 = vadd.f32 1.0, %v1348_v29  ;;  %1290 = vmatprep.mubr.msk.bf16.mxu0 %vm616_vm3, %v1019_v49  ;;  %v1015_v63 = vmul.f32 %v1007_v53, %v983_v28 }
 0x5b5   : > { %v1350_v54 = vpop.eup %1349  ;;  %1291 = vmatmul.mubr.msk.bf16.vlgmr.msra.gmra.mxu0 %vm616_vm3, %v1020_v52  ;;  %v1017_v1 = vmul.f32 %v1009_v57, %v985_v35 }
 0x5b6   : > { %v1008_v60 = vadd.f32 1.0, %v1350_v54  ;;  %v1018_v42 = vmul.f32 %v1010_v19, %v986_v58 }
 0x5b8   : > { %v1016_v0 = vmul.f32 %v1008_v60, %v984_v59  ;;  %v1022_v4 = vpack.c.bf16 %v1018_v42, %v1017_v1 }
 0x5ba   : > { %v1021_v3 = vpack.c.bf16 %v1016_v0, %v1015_v63 }
 0x5bc   : > { %1294 = vmatprep.mubr.msk.bf16.mxu0 %vm616_vm3, %v1021_v3 }
 0x5bd   : > { %1295 = vmatmul.mubr.msk.bf16.gmra.mxu0 %vm616_vm3, %v1022_v4 }
 0x675   : > { %v1292_v7 = vpop.f32.mrf.mxu0 }
 0x676   : > { %v1101_v8 = vadd.f32 %v1292_v7, %v1221_v6 }
 0x677   : > { %v1092_v9 = vpop.f32.mrf.mxu0 }
 0x678   : > { %v1125_v10 = vadd.f32 %v1101_v8, %v1508_v50  ;;  %v1093_v13 = vadd.f32 %v1221_v6, %v1092_v9 }
 0x679   : > { %v1293_v14 = vpop.f32.mrf.mxu0 }
 0x67a   : > { %1133 = vst.msk [vmem:[%s521_s17 + $0x10] sm:$0xff] %vm616_vm3, %v1125_v10  ;;  %v1123_v15 = vadd.f32 %v1093_v13, %v1510_v51  ;;  %v1104_v16 = vadd.f32 %v1293_v14, %v1221_v6 }
 0x67b   : > { %v1095_v17 = vpop.f32.mrf.mxu0 }
 0x67c   : > { %1131 = vst.msk [vmem:[%s521_s17] sm:$0xff] %vm616_vm3, %v1123_v15  ;;  %v1126_v18 = vadd.f32 %v1104_v16, %v1528_v62  ;;  %v1096_v21 = vadd.f32 %v1221_v6, %v1095_v17 }
 0x67d   : > { %v1296_v22 = vpop.f32.mrf.mxu0 }
 0x67e   : > { %1134 = vst.msk [vmem:[%s521_s17 + $0x18] sm:$0xff] %vm616_vm3, %v1126_v18  ;;  %v1124_v23 = vadd.f32 %v1096_v21, %v1518_v56  ;;  %v1117_v24 = vadd.f32 %v1296_v22, %v1221_v6 }
 0x67f   : > { %v1108_v50 = vpop.f32.mrf.mxu0 }
 0x680   : > { %1132 = vst.msk [vmem:[%s521_s17 + $0x8] sm:$0xff] %vm616_vm3, %v1124_v23  ;;  %v1129_v25 = vadd.f32 %v1117_v24, %v1526_v61  ;;  %v1109_v26 = vadd.f32 %v1221_v6, %v1108_v50 }
 0x681   : > { %v1297_v51 = vpop.f32.mrf.mxu0 }
 0x682   : > { %1137 = vst.msk [vmem:[%s521_s17 + $0x30] sm:$0xff] %vm616_vm3, %v1129_v25  ;;  %v1127_v27 = vadd.f32 %v1109_v26, %v1516_v55  ;;  %v1120_v30 = vadd.f32 %v1297_v51, %v1221_v6 }
 0x683   : > { %v1111_v62 = vpop.f32.mrf.mxu0 }
 0x684   : > { %1135 = vst.msk [vmem:[%s521_s17 + $0x20] sm:$0xff] %vm616_vm3, %v1127_v27  ;;  %v1130_v31 = vadd.f32 %v1120_v30, %v1540_v5  ;;  %v1112_v32 = vadd.f32 %v1221_v6, %v1111_v62 }
 0x686   : > { %1138 = vst.msk [vmem:[%s521_s17 + $0x38] sm:$0xff] %vm616_vm3, %v1130_v31  ;;  %v1128_v56 = vadd.f32 %v1112_v32, %v1535_v2 }
 0x688   : > { %1136 = vst.msk [vmem:[%s521_s17 + $0x28] sm:$0xff] %vm616_vm3, %v1128_v56 }
 0x689 PF: > { %s26_s21 = sadd.s32 1, %s1357_s21  }
 0x68a   : > { %p23_p4 = scmp.ge.s32.totalorder %s26_s21, 4  }
 0x68c   :  { %25 = sbr.rel (!%p23_p4) target bundleno = 2 (0x2), region = 115 }

</bundles_post_ra>
